<compile_context>
chip_gen: v6e
topology: v6e:2x2x1
jax: 0.10.0
libtpu: 0.0.40
codegen_flags: <defaults>
</compile_context>

<pallas_src>
import functools

import jax
import jax.numpy as jnp
from jax.experimental import pallas as pl
from jax.experimental.pallas import tpu as pltpu

_MiB = 1 << 20
# Keep the kernel's VMEM footprint under this (safe headroom for v7x 64 MiB/TC).
_VMEM_BUDGET = 48 * _MiB


def _round_up(x: int, m: int) -> int:
    return ((x + m - 1) // m) * m


# ---------------------------------------------------------------------------
# Kernels
# ---------------------------------------------------------------------------
def _encoder_kernel_resident(x_ref, w_ref, b_ref, o_ref, *, no_imgnorm: bool,
                             use_abs: bool):
    """Weight fully VMEM-resident: one bf16 MXU matmul + fused f32 finalize."""
    feat = jnp.dot(x_ref[...], w_ref[...], preferred_element_type=jnp.float32)
    feat = feat + b_ref[...]                       # f32 bias broadcast
    if not no_imgnorm:
        # Row L2 norm in f32 before any downcast; rsqrt lowers to the EUP.
        feat = feat * jax.lax.rsqrt(jnp.sum(feat * feat, axis=-1, keepdims=True))
    if use_abs:
        feat = jnp.abs(feat)
    o_ref[...] = feat.astype(o_ref.dtype)


def _encoder_kernel_tiled(x_ref, w_ref, b_ref, o_ref, acc_ref, *,
                          no_imgnorm: bool, use_abs: bool):
    """Fallback: K-tiled matmul with persistent f32 accumulator."""
    k = pl.program_id(1)

    @pl.when(k == 0)
    def _():
        acc_ref[...] = jnp.zeros_like(acc_ref)

    acc_ref[...] += jnp.dot(x_ref[...], w_ref[...],
                            preferred_element_type=jnp.float32)

    @pl.when(k == pl.num_programs(1) - 1)
    def _():
        feat = acc_ref[...] + b_ref[...]
        if not no_imgnorm:
            feat = feat * jax.lax.rsqrt(
                jnp.sum(feat * feat, axis=-1, keepdims=True))
        if use_abs:
            feat = jnp.abs(feat)
        o_ref[...] = feat.astype(o_ref.dtype)


# ---------------------------------------------------------------------------
# Wrapper
# ---------------------------------------------------------------------------
def _prepare_params(weight, bias, K_pad, N_pad):
    """Transpose + bf16-cast + pad the Linear params (hoist/cache per model)."""
    N, K = weight.shape
    w_t = weight.astype(jnp.bfloat16).T            # (K, N) bf16
    if (K_pad, N_pad) != (K, N):
        w_t = jnp.pad(w_t, ((0, K_pad - K), (0, N_pad - N)))
    b = bias.astype(jnp.float32).reshape(1, N)
    if N_pad != N:
        b = jnp.pad(b, ((0, 0), (0, N_pad - N)))
    return w_t, b


def encoder_image_precomp_forward(images, weight, bias, *, use_abs=False,
                                  no_imgnorm=False, tm=256, tk=512,
                                  out_dtype=None):
    """images: (B, img_dim); weight: (embed_size, img_dim) [torch layout];
    bias: (embed_size,). Returns (B, embed_size)."""
    B, K = images.shape
    N, Kw = weight.shape
    assert Kw == K, "weight must be (embed_size, img_dim)"
    if out_dtype is None:
        out_dtype = images.dtype
    out_itemsize = jnp.dtype(out_dtype).itemsize

    # 256-aligned contraction/output widths (v6e/v7x MXU is 2x256x256; still
    # 128-divisible for v5e's 4x128x128). Output stays lane-dense.
    K_pad = _round_up(K, 256)
    N_pad = _round_up(N, 256)

    # Row tile: multiple of 16 (bf16 sublane packing); cap so grid[0] >= 2 once
    # the padded batch spans >= 256 rows, so both v7x TensorCores get work.
    B16 = _round_up(B, 16)
    tm_eff = min(tm, B16)
    if B16 >= 256:
        tm_eff = min(tm_eff, max(128, _round_up((B16 + 1) // 2, 16)))

    def vmem_resident(tm_):
        return (2 * K_pad * N_pad * 2            # bf16 W^T (pipeline slots)
                + 2 * tm_ * K_pad * 2            # bf16 image tiles
                + 2 * 8 * N_pad * 4              # f32 bias (sublane-padded)
                + 2 * tm_ * N_pad * out_itemsize)

    def vmem_tiled(tm_, tk_):
        return (2 * tm_ * tk_ * 2 + 2 * tk_ * N_pad * 2
                + 2 * 8 * N_pad * 4 + 2 * tm_ * N_pad * out_itemsize
                + tm_ * N_pad * 4)               # + f32 accumulator scratch

    resident = vmem_resident(tm_eff) <= _VMEM_BUDGET

    if resident:
        tk_eff = K_pad
        vmem_est = vmem_resident(tm_eff)
    else:
        # Stream W^T in K-tiles; enlarge tm so each streamed weight block is
        # reused across more rows, then shrink until it fits the VMEM budget.
        tm_eff = min(max(tm, 512), B16)
        tk_eff = min(tk, K_pad)
        while vmem_tiled(tm_eff, tk_eff) > _VMEM_BUDGET and tm_eff > 64:
            tm_eff = max(64, _round_up(tm_eff // 2, 16))
        while vmem_tiled(tm_eff, tk_eff) > _VMEM_BUDGET and tk_eff > 256:
            tk_eff = max(256, tk_eff // 2)
        K_pad = _round_up(K_pad, tk_eff)
        vmem_est = vmem_tiled(tm_eff, tk_eff)
        # TODO(synk): for extreme embed_size the budget may still be exceeded on
        # v7x (64 MiB VMEM); that would need N-tiling plus a second norm pass.

    B_pad = _round_up(B16, tm_eff)
    vmem_limit = int(min(max(vmem_est + 12 * _MiB, 32 * _MiB), 120 * _MiB))

    # Param prep (transpose/bf16/pad) — hoist & cache per model in real use.
    w_t_p, bias_p = _prepare_params(weight, bias, K_pad, N_pad)
    images_bf16 = images.astype(jnp.bfloat16)
    if (B_pad, K_pad) != (B, K):
        images_bf16 = jnp.pad(images_bf16, ((0, B_pad - B), (0, K_pad - K)))

    if resident:
        grid = (B_pad // tm_eff,)
        kernel = functools.partial(_encoder_kernel_resident,
                                   no_imgnorm=no_imgnorm, use_abs=use_abs)
        cost = pl.CostEstimate(
            flops=2 * B_pad * K_pad * N_pad,
            transcendentals=0 if no_imgnorm else B_pad,
            bytes_accessed=(B_pad * K_pad * 2 + K_pad * N_pad * 2
                            + N_pad * 4 + B_pad * N_pad * out_itemsize))
        out_p = pl.pallas_call(
            kernel,
            out_shape=jax.ShapeDtypeStruct((B_pad, N_pad), out_dtype),
            grid_spec=pltpu.PrefetchScalarGridSpec(
                num_scalar_prefetch=0,
                grid=grid,
                in_specs=[
                    pl.BlockSpec((tm_eff, K_pad), lambda i: (i, 0)),  # images
                    pl.BlockSpec((K_pad, N_pad), lambda i: (0, 0)),   # W^T resident
                    pl.BlockSpec((1, N_pad), lambda i: (0, 0)),       # bias (f32)
                ],
                out_specs=pl.BlockSpec((tm_eff, N_pad), lambda i: (i, 0)),
            ),
            compiler_params=pltpu.CompilerParams(
                dimension_semantics=("parallel",),
                vmem_limit_bytes=vmem_limit),
            cost_estimate=cost,
        )(images_bf16, w_t_p, bias_p)
    else:
        grid = (B_pad // tm_eff, K_pad // tk_eff)
        kernel = functools.partial(_encoder_kernel_tiled,
                                   no_imgnorm=no_imgnorm, use_abs=use_abs)
        cost = pl.CostEstimate(
            flops=2 * B_pad * K_pad * N_pad,
            transcendentals=0 if no_imgnorm else B_pad,
            bytes_accessed=(B_pad * K_pad * 2
                            + K_pad * N_pad * 2 * grid[0]   # weight re-stream
                            + N_pad * 4 + B_pad * N_pad * out_itemsize))
        out_p = pl.pallas_call(
            kernel,
            out_shape=jax.ShapeDtypeStruct((B_pad, N_pad), out_dtype),
            grid_spec=pltpu.PrefetchScalarGridSpec(
                num_scalar_prefetch=0,
                grid=grid,
                in_specs=[
                    pl.BlockSpec((tm_eff, tk_eff), lambda i, k: (i, k)),
                    pl.BlockSpec((tk_eff, N_pad), lambda i, k: (k, 0)),
                    pl.BlockSpec((1, N_pad), lambda i, k: (0, 0)),
                ],
                out_specs=pl.BlockSpec((tm_eff, N_pad), lambda i, k: (i, 0)),
                scratch_shapes=[pltpu.VMEM((tm_eff, N_pad), jnp.float32)],
            ),
            compiler_params=pltpu.CompilerParams(
                dimension_semantics=("parallel", "arbitrary"),
                vmem_limit_bytes=vmem_limit),
            cost_estimate=cost,
        )(images_bf16, w_t_p, bias_p)

    return out_p[:B, :N]


# ---------------------------------------------------------------------------
# Reference + demo
# ---------------------------------------------------------------------------
def _reference_forward(images, weight, bias, *, use_abs=False, no_imgnorm=False):
    feat = images.astype(jnp.float32) @ weight.astype(jnp.float32).T \
        + bias.astype(jnp.float32)
    if not no_imgnorm:
        norm = jnp.sqrt(jnp.sum(feat * feat, axis=1, keepdims=True))
        feat = feat / norm
    if use_abs:
        feat = jnp.abs(feat)
    return feat


if __name__ == "__main__":
    # Small shapes consistent with the module: batch=5, img_dim=40, embed=48
    # (deliberately non-tile-aligned to exercise the padding path).
    B, img_dim, embed_size = 5, 40, 48
    key = jax.random.PRNGKey(0)
    k1, k2, k3 = jax.random.split(key, 3)

    images = jax.random.normal(k1, (B, img_dim), dtype=jnp.float32)
    # Xavier-uniform-ish init, as in the module.
    r = jnp.sqrt(6.0) / jnp.sqrt(img_dim + embed_size)
    weight = jax.random.uniform(k2, (embed_size, img_dim), jnp.float32, -r, r)
    bias = jnp.zeros((embed_size,), jnp.float32)

    ok = True
    for use_abs, no_imgnorm in [(False, False), (True, False),
                                (False, True), (True, True)]:
        out = encoder_image_precomp_forward(
            images, weight, bias, use_abs=use_abs, no_imgnorm=no_imgnorm)
        out = jax.block_until_ready(out)
        ref = _reference_forward(
            images, weight, bias, use_abs=use_abs, no_imgnorm=no_imgnorm)
        # bf16 matmul operands (f32 accumulation) -> looser tolerance than f32.
        if not jnp.allclose(out, ref, atol=2e-2, rtol=2e-2):
            ok = False

    if ok:
        print("KERNEL_OK")
    else:
        print("KERNEL_MISMATCH")
</pallas_src>

<mosaic_0001>
module attributes {stable_mosaic.version = 11 : i64} {
  func.func @_encoder_kernel_resident(%arg0: i32, %arg1: memref<16x256xbf16, #tpu.memory_space<vmem>>, %arg2: memref<256x256xbf16, #tpu.memory_space<vmem>>, %arg3: memref<1x256xf32, #tpu.memory_space<vmem>>, %arg4: memref<16x256xf32, #tpu.memory_space<vmem>>) attributes {dimension_semantics = [#tpu.dimension_semantics<parallel>], iteration_bounds = array<i64: 1>, scalar_prefetch = 0 : i64, scratch_operands = 0 : i64, tpu.core_type = #tpu.core_type<tc>, window_params = [{transform_indices = @transform_0, window_bounds = array<i64: 16, 256>}, {pipeline_mode = #tpu.pipeline_mode<synchronous>, transform_indices = @transform_1, window_bounds = array<i64: 256, 256>}, {pipeline_mode = #tpu.pipeline_mode<synchronous>, transform_indices = @transform_2, window_bounds = array<i64: 1, 256>}, {transform_indices = @transform_3, window_bounds = array<i64: 16, 256>}]} {
    %c0 = arith.constant 0 : index
    %c0_0 = arith.constant 0 : index
    %0 = vector.load %arg1[%c0, %c0_0] : memref<16x256xbf16, #tpu.memory_space<vmem>>, vector<16x256xbf16>
    %c0_1 = arith.constant 0 : index
    %c0_2 = arith.constant 0 : index
    %1 = vector.load %arg2[%c0_1, %c0_2] : memref<256x256xbf16, #tpu.memory_space<vmem>>, vector<256x256xbf16>
    %cst = arith.constant dense<0.000000e+00> : vector<16x256xf32>
    %2 = tpu.matmul %0, %1, %cst {dimension_numbers = #tpu.dot_dimension_numbers<[1], [0], [0], [1], [0, 0, 1, 1], [], []>} : vector<16x256xbf16>, vector<256x256xbf16>, vector<16x256xf32> -> vector<16x256xf32>
    %c0_3 = arith.constant 0 : index
    %c0_4 = arith.constant 0 : index
    %3 = vector.load %arg3[%c0_3, %c0_4] : memref<1x256xf32, #tpu.memory_space<vmem>>, vector<1x256xf32>
    %4 = vector.broadcast %3 : vector<1x256xf32> to vector<16x256xf32>
    %5 = arith.addf %2, %4 : vector<16x256xf32>
    %6 = arith.mulf %5, %5 : vector<16x256xf32>
    %cst_5 = arith.constant dense<0.000000e+00> : vector<16xf32>
    %7 = vector.multi_reduction <add>, %6, %cst_5 [1] : vector<16x256xf32> to vector<16xf32>
    %8 = vector.shape_cast %7 : vector<16xf32> to vector<16x1xf32>
    %9 = math.rsqrt %8 : vector<16x1xf32>
    %10 = vector.broadcast %9 : vector<16x1xf32> to vector<16x256xf32>
    %11 = arith.mulf %5, %10 : vector<16x256xf32>
    %c0_6 = arith.constant 0 : index
    %c0_7 = arith.constant 0 : index
    %12 = vector.load %arg4[%c0_6, %c0_7] : memref<16x256xf32, #tpu.memory_space<vmem>>, vector<16x256xf32>
    tpu.vector_store %arg4[%c0_6, %c0_7], %11 {strides = array<i32>} : memref<16x256xf32, #tpu.memory_space<vmem>>, vector<16x256xf32>,
    return
  }
  func.func @transform_0(%arg0: i32) -> (i32, i32) {
    %c0_i32 = arith.constant 0 : i32
    %c0_i32_0 = arith.constant 0 : i32
    return %arg0, %c0_i32 : i32, i32
  }
  func.func @transform_1(%arg0: i32) -> (i32, i32) {
    %c0_i32 = arith.constant 0 : i32
    %c0_i32_0 = arith.constant 0 : i32
    %c0_i32_1 = arith.constant 0 : i32
    return %c0_i32, %c0_i32_0 : i32, i32
  }
  func.func @transform_2(%arg0: i32) -> (i32, i32) {
    %c0_i32 = arith.constant 0 : i32
    %c0_i32_0 = arith.constant 0 : i32
    %c0_i32_1 = arith.constant 0 : i32
    return %c0_i32, %c0_i32_0 : i32, i32
  }
  func.func @transform_3(%arg0: i32) -> (i32, i32) {
    %c0_i32 = arith.constant 0 : i32
    %c0_i32_0 = arith.constant 0 : i32
    return %arg0, %c0_i32 : i32, i32
  }
}

</mosaic_0001>

<bundles_post_ra>
// kernel: tpu_custom_call.1
= control target key start
LH: loop header
LB: loop body
LE: loop exit
PB: predicated region body
PF: predicated region fallthrough
CT: control target
= control target key end

     0   :  { %8 = vsyncpa [#allocation3], 0  ;;  %s541_s0 = inlined_call_operand.hbm [shape: bf16[16,256], index: 0, kind: input, shape index: {}]   ;;  %s542_s1 = inlined_call_operand.hbm [shape: bf16[256,256], index: 1, kind: input, shape index: {}]   ;;  %s543_s2 = inlined_call_operand.vmem [shape: f32[1,256], index: 2, kind: input, shape index: {}]   ;;  %s544_s3 = inlined_call_operand.hbm [shape: f32[16,256], index: 3, kind: output, shape index: {}]  }
   0x1   :  { %9 = vsyncpa [#allocation6], 0 }
   0x2   :  { %10 = vsyncpa [#allocation4], 0  ;;  %s502_s12 = smov [#allocation2]  }
   0x3   :  { %s16_s13 = sshll.u32 %s502_s12, 4  ;;  %s17_s13 = int_to_ptr.vmem [resolvable:$true] %s16_s13 }
   0x4   :  { %s444_s14 = scalar_lea.vmem %s17_s13, 256  ;;  %p449_p1 = scmp.lt.s32.totalorder %s17_s13, %s17_s13 }
   0x5   :  { %p445_p0 = scmp.ne.s32.totalorder %s17_s13, %s444_s14  ;;  %p450_p2 = scmp.lt.s32.totalorder %s444_s14, %s444_s14 }
   0x7   :  { %p451_p3 = por %p450_p2, %p449_p1 }
   0x9   :  { %p452_p4 = pnand %p451_p3, %p445_p0 }
   0xb   :  { %455 = shalt.err (!%p452_p4)
}
   0xc   :  { %s503_s15 = smov 128   ;;  %s504_s16 = smov 8  }
   0xd   :  { %22 = dma.hbm_to_vmem [thread:$0]  %s541_s0, 256, %s17_s13, [#allocation3], %s503_s15, %s503_s15, %s504_s16  }
   0xe   :  { %s505_s19 = smov [#allocation5]  }
   0xf   :  { %s28_s20 = sshll.u32 %s505_s19, 4  ;;  %s29_s20 = int_to_ptr.vmem [resolvable:$true] %s28_s20 }
  0x10   :  { %s464_s21 = scalar_lea.vmem %s29_s20, 4096  ;;  %p469_p6 = scmp.lt.s32.totalorder %s29_s20, %s29_s20 }
  0x11   :  { %p465_p5 = scmp.ne.s32.totalorder %s29_s20, %s464_s21  ;;  %p470_p7 = scmp.lt.s32.totalorder %s464_s21, %s464_s21 }
  0x13   :  { %p471_p8 = por %p470_p7, %p469_p6 }
  0x15   :  { %p472_p9 = pnand %p471_p8, %p465_p5 }
  0x17   :  { %475 = shalt.err (!%p472_p9)
}
  0x18   :  { %34 = dma.hbm_to_vmem [thread:$0]  %s542_s1, 4096, %s29_s20, [#allocation6], %s503_s15, %s503_s15, %s504_s16  }
  0x19   :  { %496 = dma.done.wait [#allocation3], 256  }
  0x1a   :  { %497 = vsyncadd [#allocation3], 4294967040 }
  0x1b   :  { %498 = dma.done.wait [#allocation6], 4096  }
  0x1c   :  { %499 = vsyncadd [#allocation6], 4294963200  ;;  %v381_v0 = vld [vmem:[#allocation5 + $0x74] ss:$8 sps:$4 sm:$0xff]   ;;  %v383_v1 = vld [vmem:[#allocation5 + $0x70] ss:$8 sps:$4 sm:$0xff]   ;;  %v79_v34 = vlaneseq }
  0x1d   :  { %259 = vmatprep.subr.bf16.mxu0 %v381_v0  ;;  %v384_v2 = vld [vmem:[#allocation5 + $0x64] ss:$8 sps:$4 sm:$0xff]   ;;  %v386_v3 = vld [vmem:[#allocation5 + $0x60] ss:$8 sps:$4 sm:$0xff]   ;;  %v387_v4 = vld [vmem:[#allocation5 + $0x54] ss:$8 sps:$4 sm:$0xff]  }
  0x1e   :  { %260 = vmatpush1.bf16.msra.mxu0 %v383_v1  ;;  %v389_v5 = vld [vmem:[#allocation5 + $0x50] ss:$8 sps:$4 sm:$0xff]   ;;  %v390_v6 = vld [vmem:[#allocation5 + $0x44] ss:$8 sps:$4 sm:$0xff]   ;;  %v392_v7 = vld [vmem:[#allocation5 + $0x40] ss:$8 sps:$4 sm:$0xff]  }
  0x1f   :  { %261 = vmatprep.subr.bf16.mxu0 %v384_v2  ;;  %v393_v8 = vld [vmem:[#allocation5 + $0x34] ss:$8 sps:$4 sm:$0xff]   ;;  %v395_v9 = vld [vmem:[#allocation5 + $0x30] ss:$8 sps:$4 sm:$0xff]   ;;  %v396_v10 = vld [vmem:[#allocation5 + $0x24] ss:$8 sps:$4 sm:$0xff]  }
  0x20   :  { %v398_v11 = vld [vmem:[#allocation5 + $0x20] ss:$8 sps:$4 sm:$0xff]   ;;  %v399_v12 = vld [vmem:[#allocation5 + $0x14] ss:$8 sps:$4 sm:$0xff]   ;;  %v401_v14 = vld [vmem:[#allocation5 + $0x10] ss:$8 sps:$4 sm:$0xff]  }
  0x21   :  { %v431_v13 = vld [vmem:[#allocation2 + $0x4] ss:$8 sps:$4 sm:$0xff]   ;;  %v402_v15 = vld [vmem:[#allocation5 + $0x4] ss:$8 sps:$4 sm:$0xff]   ;;  %v404_v16 = vld [vmem:[#allocation5] ss:$8 sps:$4 sm:$0xff]  }
  0x22   :  { %262 = vmatpush1.bf16.msra.mxu0 %v386_v3  ;;  %291 = vmatprep.mubr.bf16.mxu0 %v431_v13  ;;  %v405_v17 = vld [vmem:[#allocation5 + $0xf4] ss:$8 sps:$4 sm:$0xff]   ;;  %v407_v18 = vld [vmem:[#allocation5 + $0xf0] ss:$8 sps:$4 sm:$0xff]   ;;  %v408_v19 = vld [vmem:[#allocation5 + $0xe4] ss:$8 sps:$4 sm:$0xff]  }
  0x23   :  { %263 = vmatprep.subr.bf16.mxu0 %v387_v4  ;;  %v410_v20 = vld [vmem:[#allocation5 + $0xe0] ss:$8 sps:$4 sm:$0xff]   ;;  %v411_v21 = vld [vmem:[#allocation5 + $0xd4] ss:$8 sps:$4 sm:$0xff]   ;;  %v413_v22 = vld [vmem:[#allocation5 + $0xd0] ss:$8 sps:$4 sm:$0xff]  }
  0x24   :  { %v414_v23 = vld [vmem:[#allocation5 + $0xc4] ss:$8 sps:$4 sm:$0xff]   ;;  %v416_v24 = vld [vmem:[#allocation5 + $0xc0] ss:$8 sps:$4 sm:$0xff]   ;;  %v417_v25 = vld [vmem:[#allocation5 + $0xb4] ss:$8 sps:$4 sm:$0xff]  }
  0x25   :  { %v419_v26 = vld [vmem:[#allocation5 + $0xb0] ss:$8 sps:$4 sm:$0xff]   ;;  %v420_v27 = vld [vmem:[#allocation5 + $0xa4] ss:$8 sps:$4 sm:$0xff]   ;;  %v422_v28 = vld [vmem:[#allocation5 + $0xa0] ss:$8 sps:$4 sm:$0xff]  }
  0x26   :  { %264 = vmatpush1.bf16.msra.mxu0 %v389_v5  ;;  %v423_v29 = vld [vmem:[#allocation5 + $0x94] ss:$8 sps:$4 sm:$0xff]   ;;  %v425_v30 = vld [vmem:[#allocation5 + $0x90] ss:$8 sps:$4 sm:$0xff]   ;;  %v426_v31 = vld [vmem:[#allocation5 + $0x84] ss:$8 sps:$4 sm:$0xff]  }
  0x27   :  { %265 = vmatprep.subr.bf16.mxu0 %v390_v6  ;;  %v428_v32 = vld [vmem:[#allocation5 + $0x80] ss:$8 sps:$4 sm:$0xff]   ;;  %v429_v33 = vld [vmem:[#allocation2] ss:$8 sps:$4 sm:$0xff]   ;;  %v80_v35 = vshrl.u32 %v79_v34, 7 }
  0x28   :  { %v77_v37 = vld [vmem:[%s543_s2] sm:$0x3]  ;;  %s506_s2 = smov [#allocation7]  }
  0x29   :  { %v81_v36 = vsub.s32 0, %v80_v35  ;;  %v85_v38 = vsub.s32 1, %v80_v35  ;;  %s327_s24 = sshll.u32 %s506_s2, 4  ;;  %s328_s24 = int_to_ptr.vmem [resolvable:$true] %s327_s24 }
  0x2a   :  { %266 = vmatpush1.bf16.msra.mxu0 %v392_v7  ;;  %s476_s25 = scalar_lea.vmem %s328_s24, 512  ;;  %p481_p11 = scmp.lt.s32.totalorder %s328_s24, %s328_s24 }
  0x2b   :  { %267 = vmatprep.subr.bf16.mxu0 %v393_v8  ;;  %v82_v39 = vrot.slane %v77_v37, %v81_v36  ;;  %v86_v40 = vrot.slane %v77_v37, %v85_v38  ;;  %p477_p10 = scmp.ne.s32.totalorder %s328_s24, %s476_s25  ;;  %p482_p12 = scmp.lt.s32.totalorder %s476_s25, %s476_s25 }
  0x2d   :  { %p483_p13 = por %p482_p12, %p481_p11 }
  0x2e   :  { %268 = vmatpush1.bf16.msra.mxu0 %v395_v9 }
  0x2f   :  { %269 = vmatprep.subr.bf16.mxu0 %v396_v10  ;;  %p484_p0 = pnand %p483_p13, %p477_p10 }
  0x32   :  { %270 = vmatpush1.bf16.msra.mxu0 %v398_v11 }
  0x33   :  { %271 = vmatprep.subr.bf16.mxu0 %v399_v12 }
  0x36   :  { %272 = vmatpush1.bf16.msra.mxu0 %v401_v14 }
  0x37   :  { %273 = vmatprep.subr.bf16.mxu0 %v402_v15 }
  0x3a   :  { %274 = vmatpush1.bf16.msra.mxu0 %v404_v16 }
  0x3b   :  { %275 = vmatprep.subr.bf16.mxu0 %v405_v17 }
  0x3e   :  { %276 = vmatpush2.bf16.msra.mxu0 %v407_v18 }
  0x3f   :  { %277 = vmatprep.subr.bf16.mxu0 %v408_v19 }
  0x42   :  { %278 = vmatpush2.bf16.msra.mxu0 %v410_v20 }
  0x43   :  { %279 = vmatprep.subr.bf16.mxu0 %v411_v21 }
  0x46   :  { %280 = vmatpush2.bf16.msra.mxu0 %v413_v22 }
  0x47   :  { %281 = vmatprep.subr.bf16.mxu0 %v414_v23 }
  0x4a   :  { %282 = vmatpush2.bf16.msra.mxu0 %v416_v24 }
  0x4b   :  { %283 = vmatprep.subr.bf16.mxu0 %v417_v25 }
  0x4e   :  { %284 = vmatpush2.bf16.msra.mxu0 %v419_v26 }
  0x4f   :  { %285 = vmatprep.subr.bf16.mxu0 %v420_v27 }
  0x52   :  { %286 = vmatpush2.bf16.msra.mxu0 %v422_v28 }
  0x53   :  { %287 = vmatprep.subr.bf16.mxu0 %v423_v29 }
  0x56   :  { %288 = vmatpush2.bf16.msra.mxu0 %v425_v30 }
  0x57   :  { %289 = vmatprep.subr.bf16.mxu0 %v426_v31 }
  0x5a   :  { %290 = vmatpush2.bf16.msra.mxu0 %v428_v32 }
  0x5d   :  { %292 = vmatmul.mubr.bf16.vlgmr.msra.gmra.mxu0 %v429_v33 }
 0x11d   :  { %v293_v41 = vpop.f32.mrf.mxu0 }
 0x11e   :  { %v294_v42 = vadd.f32 %v293_v41, %v82_v39 }
 0x11f   :  { %v295_v43 = vpop.f32.mrf.mxu0 }
 0x120   :  { %v296_v44 = vadd.f32 %v295_v43, %v86_v40  ;;  %v302_v47 = vmul.f32 %v294_v42, %v294_v42 }
 0x121   :  { %v297_v45 = vpop.f32.mrf.mxu0 }
 0x122   :  { %v298_v46 = vadd.f32 %v297_v45, %v82_v39  ;;  %v303_v48 = vmul.f32 %v296_v44, %v296_v44 }
 0x123   :  { %v299_v49 = vpop.f32.mrf.mxu0 }
 0x124   :  { %v300_v50 = vadd.f32 %v299_v49, %v86_v40  ;;  %v306_v51 = vadd.f32 %v303_v48, %v302_v47  ;;  %v304_v52 = vmul.f32 %v298_v46, %v298_v46 }
 0x126   :  { %v305_v53 = vmul.f32 %v300_v50, %v300_v50  ;;  %307 = vadd.xlane.f32.xlu0 %v306_v51 }
 0x128   :  { %v309_v54 = vadd.f32 %v305_v53, %v304_v52 }
 0x12a   :  { %310 = vadd.xlane.f32.xlu0 %v309_v54 }
 0x1af   :  { %v308_v55 = vpop.xlane.xlu0 %307 }
 0x1b0   :  { %432 = vrsqrt.f32 %v308_v55 }
 0x1b3   :  { %v311_v56 = vpop.xlane.xlu0 %310 }
 0x1b4   :  { %434 = vrsqrt.f32 %v311_v56 }
 0x1bd   :  { %v433_v57 = vpop.eup %432 }
 0x1be   :  { %v314_v58 = vmul.f32 %v433_v57, %v294_v42  ;;  %v315_v59 = vmul.f32 %v433_v57, %v296_v44 }
 0x1c0   :  { %318 = vst [vmem:[#allocation7] sm:$0xff] %v314_v58  ;;  %319 = vst [vmem:[#allocation7 + $0x8] sm:$0xff] %v315_v59 }
 0x1c1   :  { %v435_v60 = vpop.eup %434 }
 0x1c2   :  { %v316_v61 = vmul.f32 %v435_v60, %v298_v46  ;;  %v317_v62 = vmul.f32 %v435_v60, %v300_v50 }
 0x1c4   :  { %320 = vst [vmem:[#allocation7 + $0x10] sm:$0xff] %v316_v61  ;;  %321 = vst [vmem:[#allocation7 + $0x18] sm:$0xff] %v317_v62 }
 0x1c5   :  { %487 = shalt.err (!%p484_p0)
}
 0x1c6   :  { %s507_s26 = smov 256   ;;  %s508_s27 = smov 16  }
 0x1c7   :  { %333 = dma.vmem_to_hbm [thread:$0]  %s328_s24, 512, %s544_s3, [#allocation4], %s507_s26, %s507_s26, %s508_s27  }
 0x1c8   :  { %500 = dma.done.wait [#allocation4], 512  }
 0x1c9   :  { %501 = vsyncadd [#allocation4], 4294966784 }
 0x1ca   :  { %337 = vsyncpa [#allocation3], 1 }
 0x1cb   :  { %338 = vsyncpa [#allocation6], 1 }
 0x1cc   :  { %339 = vsyncpa [#allocation4], 1 }

</bundles_post_ra>
